<compile_context>
chip_gen: v7x
topology: tpu7x:2x2x1
jax: 0.10.0
libtpu: 0.0.40
codegen_flags: <defaults>
</compile_context>

<pallas_src>
import jax
import jax.numpy as jnp
from jax import lax
from jax.experimental import pallas as pl
from jax.experimental.pallas import tpu as pltpu


def _phase1_kernel(a_ref, qs_ref, lamf_ref, lams_ref, w_ref, m_ref, t_acc):
    """M[:, j] = W @ (G[:, j] * sum_k A[:, k_blk] @ Q_S[k_blk, j_blk])."""
    k = pl.program_id(1)                       # reduction axis (last, arbitrary)

    @pl.when(k == 0)
    def _():
        t_acc[...] = jnp.zeros_like(t_acc)

    # (din, blk) @ (blk, blk) -> (din, blk), f32 accumulation on the MXU.
    t_acc[...] += jnp.dot(a_ref[...], qs_ref[...],
                          preferred_element_type=jnp.float32)

    @pl.when(k == pl.num_programs(1) - 1)
    def _():
        # G block computed once per output block; gamma is pre-folded into lamf.
        g = 1.0 / (1.0 - lamf_ref[...] * lams_ref[...])           # (din, blk)
        m_ref[...] = jnp.dot(w_ref[...], g * t_acc[...],
                             preferred_element_type=jnp.float32)   # (dout, blk)


def _phase2_kernel(m_ref, qs_ref, out_ref):
    """out^T[:, i] = sum_j M[:, j_blk] @ Q_S[i_blk, j_blk]^T (no transpose)."""
    j = pl.program_id(1)                       # reduction axis (last, arbitrary)

    @pl.when(j == 0)
    def _():
        out_ref[...] = jnp.zeros_like(out_ref)

    # (dout, blk_j) x (blk_i, blk_j) contracted on axis 1 of both -> (dout, blk_i)
    out_ref[...] += lax.dot_general(
        m_ref[...], qs_ref[...],
        dimension_numbers=(((1,), (1,)), ((), ())),
        preferred_element_type=jnp.float32)


def _round_up(v, m):
    return (v + m - 1) // m * m


def eignn_forward(x, F, gamma, wb, Q_S, Lambda_S, *, block=512):
    """x: (n, din) node features.  Returns (n, dout) = B(Z.T)."""
    n, din = x.shape
    dout = wb.shape[0]

    # ---- small dense precompute (plain JAX glue) ----
    # TODO(synk): eigh has no Pallas equivalent; the g(F) eigendecomposition
    # (din x din) and graph-eigendecomposition stay in plain JAX.
    eps_F = 1e-12
    FF = F.T @ F
    gF = FF / (jnp.linalg.norm(FF) + eps_F)
    Lambda_F, Q_F = jnp.linalg.eigh(gF)
    Q_F = Q_F.astype(jnp.float32)

    # Exact algebraic folds: A = Q_F^T X, W = W_B Q_F, gamma folded into L_F.
    A = (x.astype(jnp.float32) @ Q_F).T                       # (din, n)
    W = wb.astype(jnp.float32) @ Q_F                          # (dout, din)
    lamf = (gamma * Lambda_F).reshape(din, 1).astype(jnp.float32)
    lams = Lambda_S.reshape(1, n).astype(jnp.float32)
    QS = Q_S.astype(jnp.float32)

    # ---- pad node axis so (blk, blk) Q_S tiles stream cleanly ----
    n_pad = _round_up(n, 128)
    blk = min(block, n_pad)
    n_pad = _round_up(n_pad, blk)
    if n_pad != n:
        pad = n_pad - n
        A = jnp.pad(A, ((0, 0), (0, pad)))
        lams = jnp.pad(lams, ((0, 0), (0, pad)))
        QS = jnp.pad(QS, ((0, pad), (0, pad)))
    nb = n_pad // blk

    # Fits v7x's 64 MiB VMEM easily: 2 double-buffered (blk, blk) f32 Q_S tiles
    # at blk=512 = 2 MiB; everything else is O(din/dout x blk).
    cparams = pltpu.CompilerParams(
        dimension_semantics=("parallel", "arbitrary"),   # output-block axis shards
        vmem_limit_bytes=48 * 1024 * 1024)               # across v7x's 2 TCs

    # Phase 1: M = W @ (G * (A @ Q_S)), lane-dense (dout, n_pad) output.
    M = pl.pallas_call(
        _phase1_kernel,
        out_shape=jax.ShapeDtypeStruct((dout, n_pad), jnp.float32),
        grid=(nb, nb),                      # (j output blocks, k reduction last)
        in_specs=[
            pl.BlockSpec((din, blk), lambda j, k: (0, k)),    # A = Q_F^T X
            pl.BlockSpec((blk, blk), lambda j, k: (k, j)),    # Q_S tile
            pl.BlockSpec((din, 1), lambda j, k: (0, 0)),      # gamma * Lambda_F
            pl.BlockSpec((1, blk), lambda j, k: (0, j)),      # Lambda_S
            pl.BlockSpec((dout, din), lambda j, k: (0, 0)),   # W = W_B Q_F
        ],
        out_specs=pl.BlockSpec((dout, blk), lambda j, k: (0, j)),
        scratch_shapes=[pltpu.VMEM((din, blk), jnp.float32)],
        compiler_params=cparams,
    )(A, QS, lamf, lams, W)

    # Phase 2: out^T = M @ Q_S^T, reduction over j (last grid axis).
    outT = pl.pallas_call(
        _phase2_kernel,
        out_shape=jax.ShapeDtypeStruct((dout, n_pad), jnp.float32),
        grid=(nb, nb),                      # (i output blocks, j reduction last)
        in_specs=[
            pl.BlockSpec((dout, blk), lambda i, j: (0, j)),   # M
            pl.BlockSpec((blk, blk), lambda i, j: (i, j)),    # Q_S tile
        ],
        out_specs=pl.BlockSpec((dout, blk), lambda i, j: (0, i)),
        compiler_params=cparams,
    )(M, QS)

    return outT[:, :n].T                    # (n, dout), matches PyTorch layout


def aug_normalized_adjacency(A):
    """S = D^-1/2 (A + I) D^-1/2 (dense, symmetric)."""
    n = A.shape[0]
    Ai = A + jnp.eye(n, dtype=A.dtype)
    deg = jnp.sum(Ai, axis=1)
    d_inv_sqrt = jnp.where(deg > 0, 1.0 / jnp.sqrt(deg), 0.0)
    return Ai * d_inv_sqrt[:, None] * d_inv_sqrt[None, :]


if __name__ == "__main__":
    key = jax.random.PRNGKey(0)
    k_x, k_f, k_b = jax.random.split(key, 3)

    n_nodes, din, dout = 16, 8, 4
    gamma = jnp.float32(0.8)

    # Node features.
    x = jax.random.normal(k_x, (n_nodes, din), dtype=jnp.float32)

    # Symmetric ring graph edge_index -> dense adjacency.
    src = jnp.arange(n_nodes)
    dst = (src + 1) % n_nodes
    Adj = jnp.zeros((n_nodes, n_nodes), jnp.float32)
    Adj = Adj.at[src, dst].set(1.0).at[dst, src].set(1.0)

    S = aug_normalized_adjacency(Adj)
    Lambda_S, Q_S = jnp.linalg.eigh(S)          # S symmetric -> eigh

    # Deterministic parameter init matching the module's __init__ shapes.
    xav = (6.0 / (din + din)) ** 0.5
    F = jax.random.uniform(k_f, (din, din), jnp.float32, -xav, xav)
    bnd = 1.0 / (din ** 0.5)
    wb = jax.random.uniform(k_b, (dout, din), jnp.float32, -bnd, bnd)

    out = eignn_forward(x, F, gamma, wb, Q_S, Lambda_S)
    out = jax.block_until_ready(out)

    # Silent sanity check against a pure-JAX reference of the original math.
    FF = F.T @ F
    gF = FF / (jnp.linalg.norm(FF) + 1e-12)
    lF, QF = jnp.linalg.eigh(gF)
    G = 1.0 / (1.0 - gamma * lF[:, None] * Lambda_S[None, :])
    Z = QF @ (G * (QF.T @ x.T @ Q_S)) @ Q_S.T
    ref = Z.T @ wb.T
    assert out.shape == (n_nodes, dout)
    assert jnp.allclose(out, ref, atol=1e-4, rtol=1e-4)

    print("KERNEL_OK")
</pallas_src>

<mosaic_0001>
module attributes {stable_mosaic.version = 11 : i64} {
  func.func @_phase1_kernel(%arg0: i32, %arg1: i32, %arg2: memref<8x128xf32, #tpu.memory_space<vmem>>, %arg3: memref<128x128xf32, #tpu.memory_space<vmem>>, %arg4: memref<8x1xf32, #tpu.memory_space<vmem>>, %arg5: memref<1x128xf32, #tpu.memory_space<vmem>>, %arg6: memref<4x8xf32, #tpu.memory_space<vmem>>, %arg7: memref<4x128xf32, #tpu.memory_space<vmem>>, %arg8: memref<8x128xf32, #tpu.memory_space<vmem>>) attributes {dimension_semantics = [#tpu.dimension_semantics<parallel>, #tpu.dimension_semantics<arbitrary>], iteration_bounds = array<i64: 1, 1>, scalar_prefetch = 0 : i64, scratch_operands = 1 : i64, tpu.core_type = #tpu.core_type<tc>, window_params = [{transform_indices = @transform_0, window_bounds = array<i64: 8, 128>}, {transform_indices = @transform_1, window_bounds = array<i64: 128, 128>}, {pipeline_mode = #tpu.pipeline_mode<synchronous>, transform_indices = @transform_2, window_bounds = array<i64: 8, 1>}, {transform_indices = @transform_3, window_bounds = array<i64: 1, 128>}, {pipeline_mode = #tpu.pipeline_mode<synchronous>, transform_indices = @transform_4, window_bounds = array<i64: 4, 8>}, {transform_indices = @transform_5, window_bounds = array<i64: 4, 128>}]} {
    %c0_i32 = arith.constant 0 : i32
    %0 = arith.cmpi eq, %arg1, %c0_i32 : i32
    %1 = arith.extui %0 : i1 to i32
    %c0_i32_0 = arith.constant 0 : i32
    %2 = arith.cmpi ne, %1, %c0_i32_0 : i32
    scf.if %2 {
      %cst_10 = arith.constant 0.000000e+00 : f32
      %12 = vector.broadcast %cst_10 : f32 to vector<8x128xf32>
      %c0_11 = arith.constant 0 : index
      %c0_12 = arith.constant 0 : index
      %13 = vector.load %arg8[%c0_11, %c0_12] : memref<8x128xf32, #tpu.memory_space<vmem>>, vector<8x128xf32>
      tpu.vector_store %arg8[%c0_11, %c0_12], %12 {strides = array<i32>} : memref<8x128xf32, #tpu.memory_space<vmem>>, vector<8x128xf32>,
    } else {
    }
    %c0 = arith.constant 0 : index
    %c0_1 = arith.constant 0 : index
    %3 = vector.load %arg8[%c0, %c0_1] : memref<8x128xf32, #tpu.memory_space<vmem>>, vector<8x128xf32>
    %c0_2 = arith.constant 0 : index
    %c0_3 = arith.constant 0 : index
    %4 = vector.load %arg2[%c0_2, %c0_3] : memref<8x128xf32, #tpu.memory_space<vmem>>, vector<8x128xf32>
    %c0_4 = arith.constant 0 : index
    %c0_5 = arith.constant 0 : index
    %5 = vector.load %arg3[%c0_4, %c0_5] : memref<128x128xf32, #tpu.memory_space<vmem>>, vector<128x128xf32>
    %cst = arith.constant dense<0.000000e+00> : vector<8x128xf32>
    %6 = tpu.matmul %4, %5, %cst {dimension_numbers = #tpu.dot_dimension_numbers<[1], [0], [0], [1], [0, 0, 1, 1], [], []>} : vector<8x128xf32>, vector<128x128xf32>, vector<8x128xf32> -> vector<8x128xf32>
    %7 = arith.addf %3, %6 : vector<8x128xf32>
    %c0_6 = arith.constant 0 : index
    %c0_7 = arith.constant 0 : index
    %8 = vector.load %arg8[%c0_6, %c0_7] : memref<8x128xf32, #tpu.memory_space<vmem>>, vector<8x128xf32>
    tpu.vector_store %arg8[%c0_6, %c0_7], %7 {strides = array<i32>} : memref<8x128xf32, #tpu.memory_space<vmem>>, vector<8x128xf32>,
    %c0_i32_8 = arith.constant 0 : i32
    %9 = arith.cmpi eq, %arg1, %c0_i32_8 : i32
    %10 = arith.extui %9 : i1 to i32
    %c0_i32_9 = arith.constant 0 : i32
    %11 = arith.cmpi ne, %10, %c0_i32_9 : i32
    scf.if %11 {
      %c0_10 = arith.constant 0 : index
      %c0_11 = arith.constant 0 : index
      %12 = vector.load %arg4[%c0_10, %c0_11] : memref<8x1xf32, #tpu.memory_space<vmem>>, vector<8x1xf32>
      %c0_12 = arith.constant 0 : index
      %c0_13 = arith.constant 0 : index
      %13 = vector.load %arg5[%c0_12, %c0_13] : memref<1x128xf32, #tpu.memory_space<vmem>>, vector<1x128xf32>
      %14 = vector.broadcast %12 : vector<8x1xf32> to vector<8x128xf32>
      %15 = vector.broadcast %13 : vector<1x128xf32> to vector<8x128xf32>
      %16 = arith.mulf %14, %15 : vector<8x128xf32>
      %cst_14 = arith.constant 1.000000e+00 : f32
      %17 = vector.broadcast %cst_14 : f32 to vector<8x128xf32>
      %18 = arith.subf %17, %16 : vector<8x128xf32>
      %cst_15 = arith.constant 1.000000e+00 : f32
      %19 = vector.broadcast %cst_15 : f32 to vector<8x128xf32>
      %20 = arith.divf %19, %18 : vector<8x128xf32>
      %c0_16 = arith.constant 0 : index
      %c0_17 = arith.constant 0 : index
      %21 = vector.load %arg6[%c0_16, %c0_17] : memref<4x8xf32, #tpu.memory_space<vmem>>, vector<4x8xf32>
      %c0_18 = arith.constant 0 : index
      %c0_19 = arith.constant 0 : index
      %22 = vector.load %arg8[%c0_18, %c0_19] : memref<8x128xf32, #tpu.memory_space<vmem>>, vector<8x128xf32>
      %23 = arith.mulf %20, %22 : vector<8x128xf32>
      %cst_20 = arith.constant dense<0.000000e+00> : vector<4x128xf32>
      %24 = tpu.matmul %21, %23, %cst_20 {dimension_numbers = #tpu.dot_dimension_numbers<[1], [0], [0], [1], [0, 0, 1, 1], [], []>} : vector<4x8xf32>, vector<8x128xf32>, vector<4x128xf32> -> vector<4x128xf32>
      %c0_21 = arith.constant 0 : index
      %c0_22 = arith.constant 0 : index
      %25 = vector.load %arg7[%c0_21, %c0_22] : memref<4x128xf32, #tpu.memory_space<vmem>>, vector<4x128xf32>
      tpu.vector_store %arg7[%c0_21, %c0_22], %24 {strides = array<i32>} : memref<4x128xf32, #tpu.memory_space<vmem>>, vector<4x128xf32>,
    } else {
    }
    return
  }
  func.func @transform_0(%arg0: i32, %arg1: i32) -> (i32, i32) {
    %c0_i32 = arith.constant 0 : i32
    %c0_i32_0 = arith.constant 0 : i32
    return %c0_i32, %arg1 : i32, i32
  }
  func.func @transform_1(%arg0: i32, %arg1: i32) -> (i32, i32) {
    %c0_i32 = arith.constant 0 : i32
    return %arg1, %arg0 : i32, i32
  }
  func.func @transform_2(%arg0: i32, %arg1: i32) -> (i32, i32) {
    %c0_i32 = arith.constant 0 : i32
    %c0_i32_0 = arith.constant 0 : i32
    %c0_i32_1 = arith.constant 0 : i32
    return %c0_i32, %c0_i32_0 : i32, i32
  }
  func.func @transform_3(%arg0: i32, %arg1: i32) -> (i32, i32) {
    %c0_i32 = arith.constant 0 : i32
    %c0_i32_0 = arith.constant 0 : i32
    return %c0_i32, %arg0 : i32, i32
  }
  func.func @transform_4(%arg0: i32, %arg1: i32) -> (i32, i32) {
    %c0_i32 = arith.constant 0 : i32
    %c0_i32_0 = arith.constant 0 : i32
    %c0_i32_1 = arith.constant 0 : i32
    return %c0_i32, %c0_i32_0 : i32, i32
  }
  func.func @transform_5(%arg0: i32, %arg1: i32) -> (i32, i32) {
    %c0_i32 = arith.constant 0 : i32
    %c0_i32_0 = arith.constant 0 : i32
    return %c0_i32, %arg0 : i32, i32
  }
}

</mosaic_0001>

<bundles_post_ra>
// kernel: tpu_custom_call.1
= control target key start
LH: loop header
LB: loop body
LE: loop exit
PB: predicated region body
PF: predicated region fallthrough
CT: control target
= control target key end

     0   :  { %10 = vsyncpa [#allocation4], 0  ;;  %s461_s0 = inlined_call_operand.vmem [shape: f32[8,128], index: 0, kind: input, shape index: {}]   ;;  %s462_s1 = inlined_call_operand.hbm [shape: f32[128,128], index: 1, kind: input, shape index: {}]   ;;  %s463_s2 = inlined_call_operand.vmem [shape: f32[8,1], index: 2, kind: input, shape index: {}]   ;;  %s464_s3 = inlined_call_operand.vmem [shape: f32[1,128], index: 3, kind: input, shape index: {}]   ;;  %s465_s4 = inlined_call_operand.vmem [shape: f32[4,8], index: 4, kind: input, shape index: {}]   ;;  %s466_s5 = inlined_call_operand.hbm [shape: f32[4,128], index: 5, kind: output, shape index: {}]  }
   0x1   :  { %11 = vsyncpa [#allocation5], 0  ;;  %s387_s18 = smov [#allocation3]   ;;  %s339_s22 = scalar_lea.hbm %s462_s1, 2048 }
   0x2   :  { %s19_s19 = sshll.u32 %s387_s18, 4  ;;  %p340_p0 = scmp.ne.s32.totalorder %s462_s1, %s339_s22  ;;  %s20_s19 = int_to_ptr.vmem [resolvable:$true] %s19_s19 }
   0x3   :  { %p343_p1 = scmp.lt.u32.totalorder %s339_s22, %s462_s1 }
   0x5   :  { %p345_p2 = pnand %p343_p1, %p340_p0 }
   0x7   :  { %348 = shalt.err (!%p345_p2)
}
   0x8   :  { %s349_s27 = scalar_lea.vmem %s20_s19, 2048  ;;  %p354_p4 = scmp.lt.s32.totalorder %s20_s19, %s20_s19 }
   0x9   :  { %p350_p3 = scmp.ne.s32.totalorder %s20_s19, %s349_s27  ;;  %p355_p5 = scmp.lt.s32.totalorder %s349_s27, %s349_s27 }
   0xb   :  { %p356_p6 = por %p355_p5, %p354_p4 }
   0xd   :  { %p357_p7 = pnand %p356_p6, %p350_p3 }
   0xf   :  { %360 = shalt.err (!%p357_p7)
}
  0x10   :  { %s388_s28 = smov 128   ;;  %s389_s29 = smov 8  }
  0x11   :  { %25 = dma.hbm_to_vmem [thread:$0]  %s462_s1, 2048, %s20_s19, [#allocation4], %s388_s28, %s388_s28, %s389_s29  }
  0x12   :  { %383 = dma.done.wait [#allocation4], 2048  }
  0x13   :  { %384 = vsyncadd [#allocation4], 4294965248  ;;  %v390_v0 = vmov 0.0|0.0   ;;  %vm391_vm0 = vmmov 0   ;;  %v392_v1 = vmov 0.0   ;;  %v393_v2 = vmov 0  }
  0x14   :  { %304 = vmatprep.subr.bf16.mxu0 %v390_v0  ;;  %296 = vmatprep.mubr.msk.f32.mxu0 %vm391_vm0, %v392_v1  ;;  %v42_v3 = vld [vmem:[#allocation3] sm:$0xff]  ;;  %v43_v4 = vld [vmem:[#allocation3 + $0x8] sm:$0xff]  ;;  %v44_v5 = vld [vmem:[#allocation3 + $0x10] sm:$0xff]  ;;  %vm153_vm1 = vcmask 64512  }
  0x15   :  { %336 = vset.pattern.permute.xlu0 %v393_v2  ;;  %299 = vmatprep.subr.mxu1 %v392_v1  ;;  %v305_v6 = vpack.c.bf16 %v43_v4, %v42_v3  ;;  %v45_v7 = vld [vmem:[#allocation3 + $0x18] sm:$0xff]  ;;  %v46_v9 = vld [vmem:[#allocation3 + $0x20] sm:$0xff]  ;;  %v47_v10 = vld [vmem:[#allocation3 + $0x28] sm:$0xff] }
  0x16   :  { %301 = vmatprep.mubr.msk.f32.mxu1 %vm391_vm0, %v392_v1  ;;  %v308_v8 = vpack.c.bf16 %v45_v7, %v44_v5  ;;  %v133_v11 = vld [vmem:[%s463_s2] sm:$0xff]  ;;  %v311_v12 = vpack.c.bf16 %v47_v10, %v46_v9  ;;  %v48_v13 = vld [vmem:[#allocation3 + $0x30] sm:$0xff]  ;;  %v49_v14 = vld [vmem:[#allocation3 + $0x38] sm:$0xff] }
  0x17   :  { %306 = vmatpush3.bf16.msra.mxu0 %v305_v6  ;;  %137 = vperm.xlu0 %336, %v133_v11   ;;  %v314_v15 = vpack.c.bf16 %v49_v14, %v48_v13  ;;  %v50_v16 = vld [vmem:[#allocation3 + $0x40] sm:$0xff]  ;;  %v51_v17 = vld [vmem:[#allocation3 + $0x48] sm:$0xff]  ;;  %v52_v19 = vld [vmem:[#allocation3 + $0x50] sm:$0xff] }
  0x18   :  { %307 = vmatprep.subr.bf16.mxu0 %v390_v0  ;;  %v317_v18 = vpack.c.bf16 %v51_v17, %v50_v16  ;;  %v53_v20 = vld [vmem:[#allocation3 + $0x58] sm:$0xff]  ;;  %v54_v22 = vld [vmem:[#allocation3 + $0x60] sm:$0xff]  ;;  %v55_v23 = vld [vmem:[#allocation3 + $0x68] sm:$0xff] }
  0x19   :  { %v320_v21 = vpack.c.bf16 %v53_v20, %v52_v19  ;;  %v323_v24 = vpack.c.bf16 %v55_v23, %v54_v22  ;;  %v56_v25 = vld [vmem:[#allocation3 + $0x70] sm:$0xff]  ;;  %v57_v26 = vld [vmem:[#allocation3 + $0x78] sm:$0xff]  ;;  %v41_v28 = vld [vmem:[%s461_s0] sm:$0xff]  ;;  %s394_s0 = smov [#allocation6]  }
  0x1a   :  { %v326_v27 = vpack.c.bf16 %v57_v26, %v56_v25  ;;  %v243_v29 = vld [vmem:[%s464_s3] ss:$0 sm:$0xff]  ;;  %s234_s13 = sshll.u32 %s394_s0, 4  ;;  %s235_s13 = int_to_ptr.vmem [resolvable:$true] %s234_s13 }
  0x1b   :  { %309 = vmatpush3.bf16.msra.mxu0 %v308_v8  ;;  %v150_v37 = vld [vmem:[%s465_s4] sm:$0xf]  ;;  %s361_s3 = scalar_lea.vmem %s235_s13, 64  ;;  %p366_p9 = scmp.lt.s32.totalorder %s235_s13, %s235_s13 }
  0x1c   :  { %310 = vmatprep.subr.bf16.mxu0 %v390_v0  ;;  %p362_p8 = scmp.ne.s32.totalorder %s235_s13, %s361_s3  ;;  %p367_p10 = scmp.lt.s32.totalorder %s361_s3, %s361_s3 }
  0x1e   :  { %p368_p11 = por %p367_p10, %p366_p9 }
  0x1f   :  { %312 = vmatpush3.bf16.msra.mxu0 %v311_v12 }
  0x20   :  { %313 = vmatprep.subr.bf16.mxu0 %v390_v0  ;;  %p369_p12 = pnand %p368_p11, %p362_p8 }
  0x23   :  { %315 = vmatpush3.bf16.msra.mxu0 %v314_v15 }
  0x24   :  { %316 = vmatprep.subr.bf16.mxu0 %v390_v0 }
  0x27   :  { %318 = vmatpush3.bf16.msra.mxu0 %v317_v18 }
  0x28   :  { %319 = vmatprep.subr.bf16.mxu0 %v390_v0 }
  0x2b   :  { %321 = vmatpush3.bf16.msra.mxu0 %v320_v21 }
  0x2c   :  { %322 = vmatprep.subr.bf16.mxu0 %v390_v0 }
  0x2f   :  { %324 = vmatpush3.bf16.msra.mxu0 %v323_v24 }
  0x30   :  { %325 = vmatprep.subr.bf16.mxu0 %v390_v0 }
  0x33   :  { %327 = vmatpush3.bf16.msra.mxu0 %v326_v27 }
  0x36   :  { %297 = vmatmul.mubr.f32.vlgmr.msra.gmra.mrb[0].mxu0 %v41_v28 }
  0x96   :  { %v138_v30 = vpop.permute.xlu0 %137 }
  0x97   :  { %v146_v31 = vmul.f32 %v243_v29, %v138_v30 }
  0x99   :  { %v147_v32 = vsub.f32 1.0, %v146_v31 }
  0x9b   :  { %337 = vrcp.f32 %v147_v32 }
  0xa5   :  { %v338_v33 = vpop.eup %337 }
 0x109   :  { %v124_v34 = vpop.f32.mrb[0].mxu0 }
 0x10a   :  { %v152_v35 = vmul.f32 %v338_v33, %v124_v34  ;;  %v298_v36 = vpop.f32.mrb[1].mxu0 }
 0x10c   :  { %300 = vmatpush3.msra.mxu1 %v152_v35 }
 0x10d   :  { %302 = vmatmul.mubr.msk.f32.vlgmr.msra.gmra.mrb[0].mxu1 %vm153_vm1, %v150_v37 }
 0x1e0   :  { %v223_v38 = vpop.f32.mrb[0].mxu1 }
 0x1e1   :  { %227 = vst [vmem:[#allocation6] sm:$0xf] %v223_v38  ;;  %v303_v39 = vpop.f32.mrb[1].mxu1 }
 0x1e2   :  { %372 = shalt.err (!%p369_p12)
}
 0x1e3   :  { %s373_s4 = scalar_lea.hbm %s466_s5, 64 }
 0x1e4   :  { %p374_p13 = scmp.ne.s32.totalorder %s466_s5, %s373_s4  ;;  %p377_p0 = scmp.lt.u32.totalorder %s373_s4, %s466_s5 }
 0x1e6   :  { %p379_p1 = pnand %p377_p0, %p374_p13 }
 0x1e8   :  { %382 = shalt.err (!%p379_p1)
}
 0x1e9   :  { %237 = dma.vmem_to_hbm [thread:$0]  %s235_s13, 64, %s466_s5, [#allocation5]  }
 0x1ea   :  { %385 = dma.done.wait [#allocation5], 64  }
 0x1eb   :  { %386 = vsyncadd [#allocation5], 4294967232 }
 0x1ec   :  { %241 = vsyncpa [#allocation4], 1 }
 0x1ed   :  { %242 = vsyncpa [#allocation5], 1 }

</bundles_post_ra>
